<compile_context>
chip_gen: v5e
topology: v5e:2x2
jax: 0.10.0
libtpu: 0.0.40
codegen_flags: <defaults>
</compile_context>

<pallas_src>
import functools
import math

import jax
import jax.numpy as jnp
from jax.experimental import pallas as pl
from jax.experimental.pallas import tpu as pltpu

BN_EPS = 1e-5
# eval-mode BatchNorm with default init (gamma=1, beta=0, mean=0, var=1) folded into convs
BN_SCALE = 1.0 / math.sqrt(1.0 + BN_EPS)

ACT_DTYPE = jnp.bfloat16   # activations / MXU inputs in bf16, f32 accumulation
_BM = 512                  # row tile for the M = N*H*W dimension of matmul-style kernels


def _round_up(x, m):
    return (x + m - 1) // m * m


# ----------------------------- Pallas kernels -----------------------------

def _matmul_kernel(a_ref, b_ref, *rest, relu_a):
    """out = (relu(a) if relu_a else a) @ b [+ addend]; f32 accumulation."""
    o_ref = rest[-1]
    a = a_ref[...]
    if relu_a:
        a = jnp.maximum(a, 0.0)
    acc = jnp.dot(a, b_ref[...], preferred_element_type=jnp.float32)
    if len(rest) == 2:                       # fused DARTS node-add epilogue
        acc = acc + rest[0][...].astype(jnp.float32)
    o_ref[...] = acc.astype(o_ref.dtype)


def pallas_matmul(a, b, relu_a=False, addend=None, out_dtype=ACT_DTYPE):
    """1x1 convs / im2col convs; optional fused residual add.  No M/K/N padding:
    partial last M tile is handled by the masked boundary block."""
    M, K = a.shape
    N = b.shape[1]
    bm = min(M, _BM)
    in_specs = [pl.BlockSpec((bm, K), lambda i: (i, 0)),
                pl.BlockSpec((K, N), lambda i: (0, 0))]
    args = [a, b]
    if addend is not None:
        in_specs.append(pl.BlockSpec((bm, N), lambda i: (i, 0)))
        args.append(addend)
    return pl.pallas_call(
        functools.partial(_matmul_kernel, relu_a=relu_a),
        out_shape=jax.ShapeDtypeStruct((M, N), out_dtype),
        grid=(pl.cdiv(M, bm),),
        in_specs=in_specs,
        out_specs=pl.BlockSpec((bm, N), lambda i: (i, 0)),
        compiler_params=pltpu.CompilerParams(dimension_semantics=("parallel",)),
    )(*args)


def _dw_kernel(x_ref, w_ref, o_ref, *, K, dilation, Ho, Wo, relu_in):
    """Depthwise KxK (stride 1) on one padded image held in VMEM; taps are in-VMEM slices."""
    x = x_ref[...].astype(jnp.float32)       # (Hp, Wp, C); f32 math (v5e-safe VPU)
    if relu_in:
        x = jnp.maximum(x, 0.0)
    acc = None
    t = 0
    for dy in range(K):
        for dx in range(K):
            oy, ox = dy * dilation, dx * dilation
            tap = x[oy:oy + Ho, ox:ox + Wo, :]
            contrib = tap * w_ref[t]          # w_ref[t]: (1, C) broadcast over (Ho, Wo, C)
            acc = contrib if acc is None else acc + contrib
            t += 1
    o_ref[...] = acc.astype(o_ref.dtype)


def depthwise(x, w, K, stride, padding, dilation=1, relu_in=False):
    N, H, W, C = x.shape
    xp = jnp.pad(x, ((0, 0), (padding, padding), (padding, padding), (0, 0)))
    Hp, Wp = H + 2 * padding, W + 2 * padding
    Ho = Hp - dilation * (K - 1)
    Wo = Wp - dilation * (K - 1)
    out = pl.pallas_call(
        functools.partial(_dw_kernel, K=K, dilation=dilation, Ho=Ho, Wo=Wo, relu_in=relu_in),
        out_shape=jax.ShapeDtypeStruct((N * Ho, Wo, C), ACT_DTYPE),
        grid=(N,),
        in_specs=[pl.BlockSpec((Hp, Wp, C), lambda n: (n, 0, 0)),
                  pl.BlockSpec((K * K, 1, C), lambda n: (0, 0, 0))],
        out_specs=pl.BlockSpec((Ho, Wo, C), lambda n: (n, 0, 0)),
        compiler_params=pltpu.CompilerParams(dimension_semantics=("parallel",)),
    )(xp.reshape(N * Hp, Wp, C), w.reshape(K * K, 1, C))
    y = out.reshape(N, Ho, Wo, C)
    if stride > 1:
        # dense stride-1 map subsampled == stride-s conv/pool (symmetric padding)
        y = y[:, ::stride, ::stride, :]
    return y


def _pool_kernel(x_ref, *rest, K, Ho, Wo, is_max, has_inv):
    o_ref = rest[-1]
    x = x_ref[...].astype(jnp.float32)
    acc = None
    for dy in range(K):
        for dx in range(K):
            tap = x[dy:dy + Ho, dx:dx + Wo, :]
            if acc is None:
                acc = tap
            else:
                acc = jnp.maximum(acc, tap) if is_max else acc + tap
    if has_inv:                               # count_include_pad=False divisor, fused
        acc = acc * rest[0][...]
    o_ref[...] = acc.astype(o_ref.dtype)


def _pool(x, K, stride, padding, is_max):
    N, H, W, C = x.shape
    pad_val = float("-inf") if is_max else 0.0
    xp = jnp.pad(x, ((0, 0), (padding, padding), (padding, padding), (0, 0)),
                 constant_values=pad_val)
    Hp, Wp = H + 2 * padding, W + 2 * padding
    Ho, Wo = Hp - K + 1, Wp - K + 1
    args = [xp.reshape(N * Hp, Wp, C)]
    in_specs = [pl.BlockSpec((Hp, Wp, C), lambda n: (n, 0, 0))]
    if not is_max:
        # analytic count_include_pad=False divisor (depends only on output position)
        def _cnt(sz):
            idx = jnp.arange(sz + 2 * padding - K + 1)
            return (jnp.minimum(idx + K, sz + padding)
                    - jnp.maximum(idx, padding)).astype(jnp.float32)
        inv = 1.0 / (_cnt(H)[:, None] * _cnt(W)[None, :])
        args.append(inv.reshape(Ho, Wo, 1))
        in_specs.append(pl.BlockSpec((Ho, Wo, 1), lambda n: (0, 0, 0)))
    out = pl.pallas_call(
        functools.partial(_pool_kernel, K=K, Ho=Ho, Wo=Wo, is_max=is_max, has_inv=not is_max),
        out_shape=jax.ShapeDtypeStruct((N * Ho, Wo, C), ACT_DTYPE),
        grid=(N,),
        in_specs=in_specs,
        out_specs=pl.BlockSpec((Ho, Wo, C), lambda n: (n, 0, 0)),
        compiler_params=pltpu.CompilerParams(dimension_semantics=("parallel",)),
    )(*args)
    y = out.reshape(N, Ho, Wo, C)
    if stride > 1:
        y = y[:, ::stride, ::stride, :]
    return y


def _add_kernel(a_ref, b_ref, o_ref):
    o_ref[...] = (a_ref[...].astype(jnp.float32)
                  + b_ref[...].astype(jnp.float32)).astype(o_ref.dtype)


def pallas_add(a, b):
    """Fallback node-sum (reduce-cell pool nodes only; normal cells fuse the add)."""
    shp = a.shape
    C = shp[-1]
    a2 = a.reshape(-1, C)
    b2 = b.reshape(-1, C)
    M = a2.shape[0]
    bm = min(M, _BM)
    out = pl.pallas_call(
        _add_kernel,
        out_shape=jax.ShapeDtypeStruct((M, C), ACT_DTYPE),
        grid=(pl.cdiv(M, bm),),
        in_specs=[pl.BlockSpec((bm, C), lambda i: (i, 0)),
                  pl.BlockSpec((bm, C), lambda i: (i, 0))],
        out_specs=pl.BlockSpec((bm, C), lambda i: (i, 0)),
        compiler_params=pltpu.CompilerParams(dimension_semantics=("parallel",)),
    )(a2, b2)
    return out.reshape(shp)


def _gap_linear_kernel(p_ref, x_ref, w_ref, b_ref, o_ref):
    """Global average pool (via tiny block-diagonal averaging matrix) fused with Linear."""
    feat = jnp.dot(p_ref[...], x_ref[...].astype(jnp.float32),
                   preferred_element_type=jnp.float32)             # (N, C)
    o_ref[...] = jnp.dot(feat.astype(w_ref.dtype), w_ref[...],
                         preferred_element_type=jnp.float32) + b_ref[...]


def pallas_gap_classifier(x, w, b):
    N, H, W, C = x.shape
    hw = H * W
    P = jnp.kron(jnp.eye(N, dtype=jnp.float32),
                 jnp.full((1, hw), 1.0 / hw, jnp.float32))          # (N, N*hw)
    return pl.pallas_call(
        _gap_linear_kernel,
        out_shape=jax.ShapeDtypeStruct((N, w.shape[1]), jnp.float32),
    )(P, x.reshape(N * hw, C), w, b)


# ----------------------------- conv glue (data movement) -----------------------------

# TODO(synk): the 3 stem convs still build an im2col patch matrix in HBM (now bf16, half
# the old traffic); a halo-loading dense-conv kernel would remove that last gather.
def _im2col(x, K, stride, padding):
    N, H, W, C = x.shape
    xp = jnp.pad(x, ((0, 0), (padding, padding), (padding, padding), (0, 0)))
    Ho = (H + 2 * padding - K) // stride + 1
    Wo = (W + 2 * padding - K) // stride + 1
    cols = []
    for dy in range(K):
        for dx in range(K):
            cols.append(xp[:, dy:dy + stride * (Ho - 1) + 1:stride,
                           dx:dx + stride * (Wo - 1) + 1:stride, :])
    patches = jnp.stack(cols, axis=3).reshape(N * Ho * Wo, K * K * C)
    return patches, (N, Ho, Wo)


def conv2d(x, w, K, stride, padding, relu_in=False):
    patches, (N, Ho, Wo) = _im2col(x, K, stride, padding)
    y = pallas_matmul(patches, w, relu_a=relu_in)
    return y.reshape(N, Ho, Wo, -1)


def pointwise(x, w, relu_in=False, addend=None):
    N, H, W, C = x.shape
    add2 = None if addend is None else addend.reshape(N * H * W, -1)
    y = pallas_matmul(x.reshape(N * H * W, C), w, relu_a=relu_in, addend=add2)
    return y.reshape(N, H, W, -1)


# ----------------------------- deterministic parameters -----------------------------

class ParamGen:
    def __init__(self, seed=0):
        self._key = jax.random.PRNGKey(seed)

    def _next(self):
        self._key, k = jax.random.split(self._key)
        return k

    def normal(self, shape, scale, dtype=jnp.float32):
        return (scale * jax.random.normal(self._next(), shape)).astype(dtype)

    def conv_dense(self, c_in, c_out, k):
        w = self.normal((k * k * c_in, c_out), 1.0 / math.sqrt(k * k * c_in))
        return (w * BN_SCALE).astype(ACT_DTYPE)     # BN (eval, default stats) folded in

    def conv_pw(self, c_in, c_out):
        w = self.normal((c_in, c_out), 1.0 / math.sqrt(c_in))
        return (w * BN_SCALE).astype(ACT_DTYPE)

    def conv_dw(self, c, k):
        return self.normal((k * k, c), 1.0 / math.sqrt(k * k))      # f32 (VPU math in f32)


# ----------------------------- DARTS ops -----------------------------

def make_relu_conv_bn(pg, c_in, c_out):
    w = pg.conv_pw(c_in, c_out)

    def apply(x, addend=None):
        return pointwise(x, w, relu_in=True, addend=addend)

    apply.fuses_add = True
    return apply


def make_factorized_reduce(pg, c_in, c_out):
    w1 = pg.conv_pw(c_in, c_out // 2)
    w2 = pg.conv_pw(c_in, c_out // 2)

    def apply(x, addend=None):
        y1 = pointwise(x[:, ::2, ::2, :], w1, relu_in=True)
        y2 = pointwise(x[:, 1::2, 1::2, :], w2, relu_in=True)
        y = jnp.concatenate([y1, y2], axis=-1)
        return y if addend is None else pallas_add(y, addend)

    apply.fuses_add = False
    return apply


def make_sep_conv(pg, c_in, c_out, k, stride, padding):
    wd1 = pg.conv_dw(c_in, k)
    wp1 = pg.conv_pw(c_in, c_in)
    wd2 = pg.conv_dw(c_in, k)
    wp2 = pg.conv_pw(c_in, c_out)

    def apply(x, addend=None):
        y = depthwise(x, wd1, k, stride, padding, 1, relu_in=True)
        y = pointwise(y, wp1)
        y = depthwise(y, wd2, k, 1, padding, 1, relu_in=True)   # ReLU after first BN fused
        return pointwise(y, wp2, addend=addend)                  # node-sum fused in epilogue

    apply.fuses_add = True
    return apply


def make_dil_conv(pg, c_in, c_out, k, stride, padding, dilation):
    wd = pg.conv_dw(c_in, k)
    wp = pg.conv_pw(c_in, c_out)

    def apply(x, addend=None):
        y = depthwise(x, wd, k, stride, padding, dilation, relu_in=True)
        return pointwise(y, wp, addend=addend)

    apply.fuses_add = True
    return apply


def make_identity():
    def apply(x, addend=None):
        return x if addend is None else pallas_add(x, addend)
    apply.fuses_add = False
    return apply


def make_max_pool(k, stride, padding):
    def apply(x, addend=None):
        y = _pool(x, k, stride, padding, is_max=True)
        return y if addend is None else pallas_add(y, addend)
    apply.fuses_add = False
    return apply


def make_avg_pool(k, stride, padding):
    def apply(x, addend=None):
        y = _pool(x, k, stride, padding, is_max=False)
        return y if addend is None else pallas_add(y, addend)
    apply.fuses_add = False
    return apply


def make_skip(pg, c, stride):
    return make_identity() if stride == 1 else make_factorized_reduce(pg, c, c)


OPS = {
    "skip_connect": make_skip,
    "sep_conv_3x3": lambda pg, c, s: make_sep_conv(pg, c, c, 3, s, 1),
    "sep_conv_5x5": lambda pg, c, s: make_sep_conv(pg, c, c, 5, s, 2),
    "sep_conv_7x7": lambda pg, c, s: make_sep_conv(pg, c, c, 7, s, 3),
    "dil_conv_3x3": lambda pg, c, s: make_dil_conv(pg, c, c, 3, s, 2, 2),
    "dil_conv_5x5": lambda pg, c, s: make_dil_conv(pg, c, c, 5, s, 4, 2),
    "max_pool_3x3": lambda pg, c, s: make_max_pool(3, s, 1),
    "avg_pool_3x3": lambda pg, c, s: make_avg_pool(3, s, 1),
}

# DARTS_V2 genotype (Liu et al.)
GENOTYPE = dict(
    normal=[("sep_conv_3x3", 0), ("sep_conv_3x3", 1), ("sep_conv_3x3", 0), ("sep_conv_3x3", 1),
            ("sep_conv_3x3", 1), ("skip_connect", 0), ("skip_connect", 0), ("dil_conv_3x3", 2)],
    normal_concat=[2, 3, 4, 5],
    reduce=[("max_pool_3x3", 0), ("max_pool_3x3", 1), ("skip_connect", 2), ("max_pool_3x3", 1),
            ("max_pool_3x3", 0), ("skip_connect", 2), ("skip_connect", 2), ("max_pool_3x3", 1)],
    reduce_concat=[2, 3, 4, 5],
)


def make_cell(pg, genotype, c_pp, c_p, c, reduction, reduction_prev):
    pre0 = (make_factorized_reduce(pg, c_pp, c) if reduction_prev
            else make_relu_conv_bn(pg, c_pp, c))
    pre1 = make_relu_conv_bn(pg, c_p, c)
    if reduction:
        op_names, indices = zip(*genotype["reduce"])
        concat = genotype["reduce_concat"]
    else:
        op_names, indices = zip(*genotype["normal"])
        concat = genotype["normal_concat"]
    steps = len(op_names) // 2
    ops = []
    for name, idx in zip(op_names, indices):
        stride = 2 if reduction and idx < 2 else 1
        ops.append(OPS[name](pg, c, stride))

    def apply(s0, s1):
        s0 = pre0(s0)
        s1 = pre1(s1)
        states = [s0, s1]
        for i in range(steps):
            op1, op2 = ops[2 * i], ops[2 * i + 1]
            x1, x2 = states[indices[2 * i]], states[indices[2 * i + 1]]
            # TODO(synk): drop_path is training-only (torch Bernoulli RNG); eval forward skips it.
            if op2.fuses_add:
                s = op2(x2, addend=op1(x1))      # h1 + h2 fused into op2's final matmul
            elif op1.fuses_add:
                s = op1(x1, addend=op2(x2))
            else:
                s = pallas_add(op1(x1), op2(x2))
            states.append(s)
        return jnp.concatenate([states[i] for i in concat], axis=-1)

    return apply, len(concat)


def build_network_imagenet(pg, C, num_classes, layers, auxiliary, genotype):
    # stem0 / stem1 (conv+BN folded, intermediate ReLUs fused into the next conv kernel)
    w_s0a = pg.conv_dense(3, C // 2, 3)
    w_s0b = pg.conv_dense(C // 2, C, 3)
    w_s1 = pg.conv_dense(C, C, 3)

    c_pp, c_p, c_curr = C, C, C
    cells = []
    reduction_prev = True
    for i in range(layers):
        if i in [layers // 3, 2 * layers // 3]:
            c_curr *= 2
            reduction = True
        else:
            reduction = False
        cell, mult = make_cell(pg, genotype, c_pp, c_p, c_curr, reduction, reduction_prev)
        reduction_prev = reduction
        cells.append(cell)
        c_pp, c_p = c_p, mult * c_curr

    # TODO(synk): AuxiliaryHeadImageNet only runs when module.training is True; this
    # eval-mode forward returns logits_aux=None, so its params are not materialized.
    ncp = _round_up(num_classes, 128)     # lane-padded classifier (unmasked stores)
    w_cls = jnp.zeros((c_p, ncp), ACT_DTYPE).at[:, :num_classes].set(
        pg.normal((c_p, num_classes), 1.0 / math.sqrt(c_p), ACT_DTYPE))
    b_cls = jnp.zeros((1, ncp), jnp.float32)

    def forward(x_nchw):
        x = jnp.transpose(x_nchw, (0, 2, 3, 1)).astype(ACT_DTYPE)   # NCHW -> NHWC, bf16
        s0 = conv2d(x, w_s0a, 3, 2, 1, relu_in=False)
        s0 = conv2d(s0, w_s0b, 3, 2, 1, relu_in=True)
        s1 = conv2d(s0, w_s1, 3, 2, 1, relu_in=True)
        for cell in cells:
            s0, s1 = s1, cell(s0, s1)
        n, h, w, c = s1.shape
        assert h == 7 and w == 7, "global AvgPool2d(7) expects a 7x7 feature map"
        logits = pallas_gap_classifier(s1, w_cls, b_cls)[:, :num_classes]
        return logits, None

    return forward


if __name__ == "__main__":
    C, num_classes, layers = 8, 10, 3
    pg = ParamGen(0)
    forward = build_network_imagenet(pg, C, num_classes, layers,
                                     auxiliary=True, genotype=GENOTYPE)
    # 224x224 input is what the architecture implies: stems (/8) + two reduction cells
    # (/4) -> 7x7 feature map for the AvgPool2d(7) global pool.
    x = jax.random.normal(jax.random.PRNGKey(0), (2, 3, 224, 224), jnp.float32)
    logits, logits_aux = forward(x)
    logits = jax.block_until_ready(logits)
    assert logits.shape == (2, num_classes)
    assert logits_aux is None
    assert bool(jnp.all(jnp.isfinite(logits)))
    print("KERNEL_OK")
</pallas_src>

<mosaic_0001>
module attributes {stable_mosaic.version = 11 : i64} {
  func.func @_matmul_kernel(%arg0: i32, %arg1: memref<512x27xbf16, #tpu.memory_space<vmem>>, %arg2: memref<27x4xbf16, #tpu.memory_space<vmem>>, %arg3: memref<512x4xbf16, #tpu.memory_space<vmem>>) attributes {dimension_semantics = [#tpu.dimension_semantics<parallel>], iteration_bounds = array<i64: 49>, scalar_prefetch = 0 : i64, scratch_operands = 0 : i64, tpu.core_type = #tpu.core_type<tc>, window_params = [{transform_indices = @transform_0, window_bounds = array<i64: 512, 27>}, {pipeline_mode = #tpu.pipeline_mode<synchronous>, transform_indices = @transform_1, window_bounds = array<i64: 27, 4>}, {transform_indices = @transform_2, window_bounds = array<i64: 512, 4>}]} {
    %c0 = arith.constant 0 : index
    %c0_0 = arith.constant 0 : index
    %0 = vector.load %arg1[%c0, %c0_0] : memref<512x27xbf16, #tpu.memory_space<vmem>>, vector<512x27xbf16>
    %c0_1 = arith.constant 0 : index
    %c0_2 = arith.constant 0 : index
    %1 = vector.load %arg2[%c0_1, %c0_2] : memref<27x4xbf16, #tpu.memory_space<vmem>>, vector<27x4xbf16>
    %cst = arith.constant dense<0.000000e+00> : vector<512x4xf32>
    %2 = tpu.matmul %0, %1, %cst {dimension_numbers = #tpu.dot_dimension_numbers<[1], [0], [0], [1], [0, 0, 1, 1], [], []>} : vector<512x27xbf16>, vector<27x4xbf16>, vector<512x4xf32> -> vector<512x4xf32>
    %3 = arith.truncf %2 : vector<512x4xf32> to vector<512x4xbf16>
    %c0_3 = arith.constant 0 : index
    %c0_4 = arith.constant 0 : index
    %4 = vector.load %arg3[%c0_3, %c0_4] : memref<512x4xbf16, #tpu.memory_space<vmem>>, vector<512x4xbf16>
    tpu.vector_store %arg3[%c0_3, %c0_4], %3 {strides = array<i32>} : memref<512x4xbf16, #tpu.memory_space<vmem>>, vector<512x4xbf16>,
    return
  }
  func.func @transform_0(%arg0: i32) -> (i32, i32) {
    %c0_i32 = arith.constant 0 : i32
    %c0_i32_0 = arith.constant 0 : i32
    return %arg0, %c0_i32 : i32, i32
  }
  func.func @transform_1(%arg0: i32) -> (i32, i32) {
    %c0_i32 = arith.constant 0 : i32
    %c0_i32_0 = arith.constant 0 : i32
    %c0_i32_1 = arith.constant 0 : i32
    return %c0_i32, %c0_i32_0 : i32, i32
  }
  func.func @transform_2(%arg0: i32) -> (i32, i32) {
    %c0_i32 = arith.constant 0 : i32
    %c0_i32_0 = arith.constant 0 : i32
    return %arg0, %c0_i32 : i32, i32
  }
}

</mosaic_0001>

<bundles_post_ra>
// kernel: tpu_custom_call.1
= control target key start
LH: loop header
LB: loop body
LE: loop exit
PB: predicated region body
PF: predicated region fallthrough
CT: control target
= control target key end

     0   :  { %s1097_s9 = smov 0   ;;  %s1326_s0 = inlined_call_operand.vmem [shape: bf16[25088,27], index: 0, kind: input, shape index: {}]   ;;  %s1327_s1 = inlined_call_operand.vmem [shape: bf16[27,4], index: 1, kind: input, shape index: {}]   ;;  %s1328_s2 = inlined_call_operand.vmem [shape: bf16[25088,4], index: 2, kind: output, shape index: {}]  }
   0x1 LB: > { %s845_s10 = sadd.s32 4294967295, %s1079_s9   ;;  %p849_p0 = scmp.ge.s32.totalorder %s1079_s9, 1  ;;  %s1079_s9 = sphi %s1097_s9, %s12_s9  }
   0x2   : > { %p113_p1 = scmp.lt.s32.totalorder %s1079_s9, 50 }
   0x4   : > { %p114_p2 = pnand %p849_p0, %p113_p1 }
   0x5   : > { %s850_s15 = sshll.u32 (!%p114_p2), %s845_s10, 6 }
   0x6   : > { %117 = sbr.rel (%p114_p2) target bundleno = 281 (0x119), region = 28  ;;  %p136_p3 = scmp.lt.s32.totalorder (!%p114_p2), %s850_s15, 3135 }
   0xb   : > { %v988_v0 = vld [vmem:[%s1327_s1 + $0x8] sm:$0xf]  ;;  %v1057_v1 = vld [vmem:[%s1327_s1 + $0x8] sm:$0x30]  ;;  %vm484_vm0 = vcmask 1044480   ;;  %vm485_vm1 = vcmask 1045504  }
   0xc   : > { %v989_v2 = vor.u32 %v1057_v1, %v988_v0  ;;  %v1081_v3 = vmov 65535   ;;  %s1330_s15 = smov (!%p136_p3, %s850_s15), 3135  ;;  %v1056_v7 = vld [vmem:[%s1327_s1] sm:$0xff]  ;;  %vm387_vm2 = vcmask 220160   ;;  %vm724_vm3 = vcmask 27648  }
   0xd   : > { %v486_v4 = vsel %vm484_vm0, 4294967295, %v1081_v3  ;;  %s851_s18 = sshll.u32 %s1330_s15, 2 }
   0xe   : > { %v487_v5 = vsel %vm485_vm1, %v486_v4, 0  ;;  %s1122_s21 = scalar_lea.vmem %s1326_s0, %s851_s18  ;;  %s1193_s24 = scalar_lea.vmem %s1328_s2, %s851_s18 }
   0xf   : > { %v489_v6 = vand.u32 %v989_v2, %v487_v5  ;;  %v1024_v8 = vld [vmem:[%s1122_s21] sm:$0xff]  ;;  %v1025_v12 = vld [vmem:[%s1122_s21 + $0x8] sm:$0xff]  ;;  %v1026_v16 = vld [vmem:[%s1122_s21 + $0x10] sm:$0xff] }
  0x10   : > { %v1032_v9 = vld [vmem:[%s1122_s21 + $0x40] sm:$0xff]  ;;  %v1033_v13 = vld [vmem:[%s1122_s21 + $0x48] sm:$0xff]  ;;  %v1034_v17 = vld [vmem:[%s1122_s21 + $0x50] sm:$0xff] }
  0x11   : > { %497 = vmatpush.bf16.msra.mxu0 %v489_v6  ;;  %1058 = vmatpush.bf16.msra.mxu1 %v489_v6  ;;  %v1040_v10 = vld [vmem:[%s1122_s21 + $0x80] sm:$0xff]  ;;  %v1041_v14 = vld [vmem:[%s1122_s21 + $0x88] sm:$0xff]  ;;  %v1042_v18 = vld [vmem:[%s1122_s21 + $0x90] sm:$0xff] }
  0x12   : > { %1059 = vmatpush.bf16.msra.mxu2 %v489_v6  ;;  %1060 = vmatpush.bf16.msra.mxu3 %v489_v6  ;;  %v1048_v11 = vld [vmem:[%s1122_s21 + $0xc0] sm:$0xff]  ;;  %v1049_v15 = vld [vmem:[%s1122_s21 + $0xc8] sm:$0xff]  ;;  %v1050_v19 = vld [vmem:[%s1122_s21 + $0xd0] sm:$0xff] }
  0x13   : > { %v1027_v20 = vld [vmem:[%s1122_s21 + $0x18] sm:$0xff]  ;;  %v1028_v24 = vld [vmem:[%s1122_s21 + $0x20] sm:$0xff]  ;;  %v1029_v28 = vld [vmem:[%s1122_s21 + $0x28] sm:$0xff] }
  0x14   : > { %v1035_v21 = vld [vmem:[%s1122_s21 + $0x58] sm:$0xff]  ;;  %v1036_v25 = vld [vmem:[%s1122_s21 + $0x60] sm:$0xff]  ;;  %v1037_v29 = vld [vmem:[%s1122_s21 + $0x68] sm:$0xff] }
  0x15   : > { %498 = vmatpush.bf16.msra.mxu0 %v1056_v7  ;;  %1061 = vmatpush.bf16.msra.mxu1 %v1056_v7  ;;  %v1043_v22 = vld [vmem:[%s1122_s21 + $0x98] sm:$0xff]  ;;  %v1044_v26 = vld [vmem:[%s1122_s21 + $0xa0] sm:$0xff]  ;;  %v1045_v30 = vld [vmem:[%s1122_s21 + $0xa8] sm:$0xff] }
  0x16   : > { %1062 = vmatpush.bf16.msra.mxu2 %v1056_v7  ;;  %1063 = vmatpush.bf16.msra.mxu3 %v1056_v7  ;;  %v1051_v23 = vld [vmem:[%s1122_s21 + $0xd8] sm:$0xff]  ;;  %v1052_v27 = vld [vmem:[%s1122_s21 + $0xe0] sm:$0xff]  ;;  %v1053_v31 = vld [vmem:[%s1122_s21 + $0xe8] sm:$0xff] }
  0x17   : > { %v1030_v32 = vld [vmem:[%s1122_s21 + $0x30] sm:$0xff]  ;;  %v1031_v36 = vld [vmem:[%s1122_s21 + $0x38] sm:$0xff] }
  0x18   : > { %990 = vmatmul.msk.bf16.vlgmr.msra.gmra.mxu0 %vm387_vm2, %v1024_v8  ;;  %998 = vmatmul.msk.bf16.vlgmr.msra.gmra.mxu1 %vm387_vm2, %v1032_v9  ;;  %v1038_v33 = vld [vmem:[%s1122_s21 + $0x70] sm:$0xff]  ;;  %v1039_v37 = vld [vmem:[%s1122_s21 + $0x78] sm:$0xff] }
  0x19   : > { %1006 = vmatmul.msk.bf16.vlgmr.msra.gmra.mxu2 %vm387_vm2, %v1040_v10  ;;  %1014 = vmatmul.msk.bf16.vlgmr.msra.gmra.mxu3 %vm387_vm2, %v1048_v11  ;;  %v1046_v34 = vld [vmem:[%s1122_s21 + $0xb0] sm:$0xff]  ;;  %v1047_v38 = vld [vmem:[%s1122_s21 + $0xb8] sm:$0xff] }
  0x1a   : > { %v1054_v35 = vld [vmem:[%s1122_s21 + $0xf0] sm:$0xff]  ;;  %v1055_v39 = vld [vmem:[%s1122_s21 + $0xf8] sm:$0xff] }
  0x28   : > { %991 = vmatmul.msk.bf16.gmra.mxu0 %vm387_vm2, %v1025_v12  ;;  %999 = vmatmul.msk.bf16.gmra.mxu1 %vm387_vm2, %v1033_v13 }
  0x29   : > { %1007 = vmatmul.msk.bf16.gmra.mxu2 %vm387_vm2, %v1041_v14  ;;  %1015 = vmatmul.msk.bf16.gmra.mxu3 %vm387_vm2, %v1049_v15 }
  0x38   : > { %992 = vmatmul.msk.bf16.gmra.mxu0 %vm387_vm2, %v1026_v16  ;;  %1000 = vmatmul.msk.bf16.gmra.mxu1 %vm387_vm2, %v1034_v17 }
  0x39   : > { %1008 = vmatmul.msk.bf16.gmra.mxu2 %vm387_vm2, %v1042_v18  ;;  %1016 = vmatmul.msk.bf16.gmra.mxu3 %vm387_vm2, %v1050_v19 }
  0x48   : > { %993 = vmatmul.msk.bf16.gmra.mxu0 %vm387_vm2, %v1027_v20  ;;  %1001 = vmatmul.msk.bf16.gmra.mxu1 %vm387_vm2, %v1035_v21 }
  0x49   : > { %1009 = vmatmul.msk.bf16.gmra.mxu2 %vm387_vm2, %v1043_v22  ;;  %1017 = vmatmul.msk.bf16.gmra.mxu3 %vm387_vm2, %v1051_v23 }
  0x58   : > { %994 = vmatmul.msk.bf16.gmra.mxu0 %vm387_vm2, %v1028_v24  ;;  %1002 = vmatmul.msk.bf16.gmra.mxu1 %vm387_vm2, %v1036_v25 }
  0x59   : > { %1010 = vmatmul.msk.bf16.gmra.mxu2 %vm387_vm2, %v1044_v26  ;;  %1018 = vmatmul.msk.bf16.gmra.mxu3 %vm387_vm2, %v1052_v27 }
  0x68   : > { %995 = vmatmul.msk.bf16.gmra.mxu0 %vm387_vm2, %v1029_v28  ;;  %1003 = vmatmul.msk.bf16.gmra.mxu1 %vm387_vm2, %v1037_v29 }
  0x69   : > { %1011 = vmatmul.msk.bf16.gmra.mxu2 %vm387_vm2, %v1045_v30  ;;  %1019 = vmatmul.msk.bf16.gmra.mxu3 %vm387_vm2, %v1053_v31 }
  0x78   : > { %996 = vmatmul.msk.bf16.gmra.mxu0 %vm387_vm2, %v1030_v32  ;;  %1004 = vmatmul.msk.bf16.gmra.mxu1 %vm387_vm2, %v1038_v33 }
  0x79   : > { %1012 = vmatmul.msk.bf16.gmra.mxu2 %vm387_vm2, %v1046_v34  ;;  %1020 = vmatmul.msk.bf16.gmra.mxu3 %vm387_vm2, %v1054_v35 }
  0x88   : > { %997 = vmatmul.msk.bf16.gmra.mxu0 %vm387_vm2, %v1031_v36  ;;  %1005 = vmatmul.msk.bf16.gmra.mxu1 %vm387_vm2, %v1039_v37 }
  0x89   : > { %1013 = vmatmul.msk.bf16.gmra.mxu2 %vm387_vm2, %v1047_v38  ;;  %1021 = vmatmul.msk.bf16.gmra.mxu3 %vm387_vm2, %v1055_v39 }
  0x95   : > { %v500_v40 = vpop.f32.mrf.mxu0  ;;  %v540_v41 = vpop.f32.mrf.mxu1 }
  0x96   : > { %v660_v42 = vpack.c.bf16 %v500_v40, %v500_v40  ;;  %v676_v43 = vpack.c.bf16 %v540_v41, %v540_v41 }
  0x98   : > { %725 = vst.msk [vmem:[%s1193_s24] sm:$0xf] %vm724_vm3, %v660_v42 }
  0x99   : > { %741 = vst.msk [vmem:[%s1193_s24 + $0x40] sm:$0xf] %vm724_vm3, %v676_v43 }
  0x9c   : > { %v580_v44 = vpop.f32.mrf.mxu2  ;;  %v620_v45 = vpop.f32.mrf.mxu3 }
  0x9d   : > { %v692_v46 = vpack.c.bf16 %v580_v44, %v580_v44  ;;  %v708_v47 = vpack.c.bf16 %v620_v45, %v620_v45  ;;  %v502_v48 = vpop.f32.mrf.mxu0  ;;  %v542_v49 = vpop.f32.mrf.mxu1 }
  0x9e   : > { %v661_v50 = vpack.c.bf16 %v502_v48, %v502_v48  ;;  %v677_v51 = vpack.c.bf16 %v542_v49, %v542_v49 }
  0x9f   : > { %757 = vst.msk [vmem:[%s1193_s24 + $0x80] sm:$0xf] %vm724_vm3, %v692_v46 }
  0xa0   : > { %773 = vst.msk [vmem:[%s1193_s24 + $0xc0] sm:$0xf] %vm724_vm3, %v708_v47 }
  0xa1   : > { %726 = vst.msk [vmem:[%s1193_s24 + $0x4] sm:$0xf] %vm724_vm3, %v661_v50 }
  0xa2   : > { %742 = vst.msk [vmem:[%s1193_s24 + $0x44] sm:$0xf] %vm724_vm3, %v677_v51 }
  0xa4   : > { %v582_v52 = vpop.f32.mrf.mxu2  ;;  %v622_v53 = vpop.f32.mrf.mxu3 }
  0xa5   : > { %v693_v54 = vpack.c.bf16 %v582_v52, %v582_v52  ;;  %v709_v55 = vpack.c.bf16 %v622_v53, %v622_v53  ;;  %v505_v56 = vpop.f32.mrf.mxu0  ;;  %v545_v57 = vpop.f32.mrf.mxu1 }
  0xa6   : > { %v662_v58 = vpack.c.bf16 %v505_v56, %v505_v56  ;;  %v678_v59 = vpack.c.bf16 %v545_v57, %v545_v57 }
  0xa7   : > { %758 = vst.msk [vmem:[%s1193_s24 + $0x84] sm:$0xf] %vm724_vm3, %v693_v54 }
  0xa8   : > { %774 = vst.msk [vmem:[%s1193_s24 + $0xc4] sm:$0xf] %vm724_vm3, %v709_v55 }
  0xa9   : > { %727 = vst.msk [vmem:[%s1193_s24 + $0x8] sm:$0xf] %vm724_vm3, %v662_v58 }
  0xaa   : > { %743 = vst.msk [vmem:[%s1193_s24 + $0x48] sm:$0xf] %vm724_vm3, %v678_v59 }
  0xac   : > { %v585_v60 = vpop.f32.mrf.mxu2  ;;  %v625_v61 = vpop.f32.mrf.mxu3 }
  0xad   : > { %v694_v62 = vpack.c.bf16 %v585_v60, %v585_v60  ;;  %v710_v63 = vpack.c.bf16 %v625_v61, %v625_v61  ;;  %v507_v0 = vpop.f32.mrf.mxu0  ;;  %v547_v1 = vpop.f32.mrf.mxu1 }
  0xae   : > { %v663_v2 = vpack.c.bf16 %v507_v0, %v507_v0  ;;  %v679_v3 = vpack.c.bf16 %v547_v1, %v547_v1 }
  0xaf   : > { %759 = vst.msk [vmem:[%s1193_s24 + $0x88] sm:$0xf] %vm724_vm3, %v694_v62 }
  0xb0   : > { %775 = vst.msk [vmem:[%s1193_s24 + $0xc8] sm:$0xf] %vm724_vm3, %v710_v63 }
  0xb1   : > { %728 = vst.msk [vmem:[%s1193_s24 + $0xc] sm:$0xf] %vm724_vm3, %v663_v2 }
  0xb2   : > { %744 = vst.msk [vmem:[%s1193_s24 + $0x4c] sm:$0xf] %vm724_vm3, %v679_v3 }
  0xb4   : > { %v587_v4 = vpop.f32.mrf.mxu2  ;;  %v627_v5 = vpop.f32.mrf.mxu3 }
  0xb5   : > { %v695_v6 = vpack.c.bf16 %v587_v4, %v587_v4  ;;  %v711_v7 = vpack.c.bf16 %v627_v5, %v627_v5  ;;  %v510_v8 = vpop.f32.mrf.mxu0  ;;  %v550_v9 = vpop.f32.mrf.mxu1 }
  0xb6   : > { %v664_v10 = vpack.c.bf16 %v510_v8, %v510_v8  ;;  %v680_v11 = vpack.c.bf16 %v550_v9, %v550_v9 }
  0xb7   : > { %760 = vst.msk [vmem:[%s1193_s24 + $0x8c] sm:$0xf] %vm724_vm3, %v695_v6 }
  0xb8   : > { %776 = vst.msk [vmem:[%s1193_s24 + $0xcc] sm:$0xf] %vm724_vm3, %v711_v7 }
  0xb9   : > { %729 = vst.msk [vmem:[%s1193_s24 + $0x10] sm:$0xf] %vm724_vm3, %v664_v10 }
  0xba   : > { %745 = vst.msk [vmem:[%s1193_s24 + $0x50] sm:$0xf] %vm724_vm3, %v680_v11 }
  0xbc   : > { %v590_v12 = vpop.f32.mrf.mxu2  ;;  %v630_v13 = vpop.f32.mrf.mxu3 }
  0xbd   : > { %v696_v14 = vpack.c.bf16 %v590_v12, %v590_v12  ;;  %v712_v15 = vpack.c.bf16 %v630_v13, %v630_v13  ;;  %v512_v16 = vpop.f32.mrf.mxu0  ;;  %v552_v17 = vpop.f32.mrf.mxu1 }
  0xbe   : > { %v665_v18 = vpack.c.bf16 %v512_v16, %v512_v16  ;;  %v681_v19 = vpack.c.bf16 %v552_v17, %v552_v17 }
  0xbf   : > { %761 = vst.msk [vmem:[%s1193_s24 + $0x90] sm:$0xf] %vm724_vm3, %v696_v14 }
  0xc0   : > { %777 = vst.msk [vmem:[%s1193_s24 + $0xd0] sm:$0xf] %vm724_vm3, %v712_v15 }
  0xc1   : > { %730 = vst.msk [vmem:[%s1193_s24 + $0x14] sm:$0xf] %vm724_vm3, %v665_v18 }
  0xc2   : > { %746 = vst.msk [vmem:[%s1193_s24 + $0x54] sm:$0xf] %vm724_vm3, %v681_v19 }
  0xc4   : > { %v592_v20 = vpop.f32.mrf.mxu2  ;;  %v632_v21 = vpop.f32.mrf.mxu3 }
  0xc5   : > { %v697_v22 = vpack.c.bf16 %v592_v20, %v592_v20  ;;  %v713_v23 = vpack.c.bf16 %v632_v21, %v632_v21  ;;  %v515_v24 = vpop.f32.mrf.mxu0  ;;  %v555_v25 = vpop.f32.mrf.mxu1 }
  0xc6   : > { %v666_v26 = vpack.c.bf16 %v515_v24, %v515_v24  ;;  %v682_v27 = vpack.c.bf16 %v555_v25, %v555_v25 }
  0xc7   : > { %762 = vst.msk [vmem:[%s1193_s24 + $0x94] sm:$0xf] %vm724_vm3, %v697_v22 }
  0xc8   : > { %778 = vst.msk [vmem:[%s1193_s24 + $0xd4] sm:$0xf] %vm724_vm3, %v713_v23 }
  0xc9   : > { %731 = vst.msk [vmem:[%s1193_s24 + $0x18] sm:$0xf] %vm724_vm3, %v666_v26 }
  0xca   : > { %747 = vst.msk [vmem:[%s1193_s24 + $0x58] sm:$0xf] %vm724_vm3, %v682_v27 }
  0xcc   : > { %v595_v28 = vpop.f32.mrf.mxu2  ;;  %v635_v29 = vpop.f32.mrf.mxu3 }
  0xcd   : > { %v698_v30 = vpack.c.bf16 %v595_v28, %v595_v28  ;;  %v714_v31 = vpack.c.bf16 %v635_v29, %v635_v29  ;;  %v517_v32 = vpop.f32.mrf.mxu0  ;;  %v557_v33 = vpop.f32.mrf.mxu1 }
  0xce   : > { %v667_v34 = vpack.c.bf16 %v517_v32, %v517_v32  ;;  %v683_v35 = vpack.c.bf16 %v557_v33, %v557_v33 }
  0xcf   : > { %763 = vst.msk [vmem:[%s1193_s24 + $0x98] sm:$0xf] %vm724_vm3, %v698_v30 }
  0xd0   : > { %779 = vst.msk [vmem:[%s1193_s24 + $0xd8] sm:$0xf] %vm724_vm3, %v714_v31 }
  0xd1   : > { %732 = vst.msk [vmem:[%s1193_s24 + $0x1c] sm:$0xf] %vm724_vm3, %v667_v34 }
  0xd2   : > { %748 = vst.msk [vmem:[%s1193_s24 + $0x5c] sm:$0xf] %vm724_vm3, %v683_v35 }
  0xd4   : > { %v597_v36 = vpop.f32.mrf.mxu2  ;;  %v637_v37 = vpop.f32.mrf.mxu3 }
  0xd5   : > { %v699_v38 = vpack.c.bf16 %v597_v36, %v597_v36  ;;  %v715_v39 = vpack.c.bf16 %v637_v37, %v637_v37  ;;  %v520_v40 = vpop.f32.mrf.mxu0  ;;  %v560_v41 = vpop.f32.mrf.mxu1 }
  0xd6   : > { %v668_v42 = vpack.c.bf16 %v520_v40, %v520_v40  ;;  %v684_v43 = vpack.c.bf16 %v560_v41, %v560_v41 }
  0xd7   : > { %764 = vst.msk [vmem:[%s1193_s24 + $0x9c] sm:$0xf] %vm724_vm3, %v699_v38 }
  0xd8   : > { %780 = vst.msk [vmem:[%s1193_s24 + $0xdc] sm:$0xf] %vm724_vm3, %v715_v39 }
  0xd9   : > { %733 = vst.msk [vmem:[%s1193_s24 + $0x20] sm:$0xf] %vm724_vm3, %v668_v42 }
  0xda   : > { %749 = vst.msk [vmem:[%s1193_s24 + $0x60] sm:$0xf] %vm724_vm3, %v684_v43 }
  0xdc   : > { %v600_v44 = vpop.f32.mrf.mxu2  ;;  %v640_v45 = vpop.f32.mrf.mxu3 }
  0xdd   : > { %v700_v46 = vpack.c.bf16 %v600_v44, %v600_v44  ;;  %v716_v47 = vpack.c.bf16 %v640_v45, %v640_v45  ;;  %v522_v48 = vpop.f32.mrf.mxu0  ;;  %v562_v49 = vpop.f32.mrf.mxu1 }
  0xde   : > { %v669_v50 = vpack.c.bf16 %v522_v48, %v522_v48  ;;  %v685_v51 = vpack.c.bf16 %v562_v49, %v562_v49 }
  0xdf   : > { %765 = vst.msk [vmem:[%s1193_s24 + $0xa0] sm:$0xf] %vm724_vm3, %v700_v46 }
  0xe0   : > { %781 = vst.msk [vmem:[%s1193_s24 + $0xe0] sm:$0xf] %vm724_vm3, %v716_v47 }
  0xe1   : > { %734 = vst.msk [vmem:[%s1193_s24 + $0x24] sm:$0xf] %vm724_vm3, %v669_v50 }
  0xe2   : > { %750 = vst.msk [vmem:[%s1193_s24 + $0x64] sm:$0xf] %vm724_vm3, %v685_v51 }
  0xe4   : > { %v602_v52 = vpop.f32.mrf.mxu2  ;;  %v642_v53 = vpop.f32.mrf.mxu3 }
  0xe5   : > { %v701_v54 = vpack.c.bf16 %v602_v52, %v602_v52  ;;  %v717_v55 = vpack.c.bf16 %v642_v53, %v642_v53  ;;  %v525_v56 = vpop.f32.mrf.mxu0  ;;  %v565_v57 = vpop.f32.mrf.mxu1 }
  0xe6   : > { %v670_v58 = vpack.c.bf16 %v525_v56, %v525_v56  ;;  %v686_v59 = vpack.c.bf16 %v565_v57, %v565_v57 }
  0xe7   : > { %766 = vst.msk [vmem:[%s1193_s24 + $0xa4] sm:$0xf] %vm724_vm3, %v701_v54 }
  0xe8   : > { %782 = vst.msk [vmem:[%s1193_s24 + $0xe4] sm:$0xf] %vm724_vm3, %v717_v55 }
  0xe9   : > { %735 = vst.msk [vmem:[%s1193_s24 + $0x28] sm:$0xf] %vm724_vm3, %v670_v58 }
  0xea   : > { %751 = vst.msk [vmem:[%s1193_s24 + $0x68] sm:$0xf] %vm724_vm3, %v686_v59 }
  0xec   : > { %v605_v60 = vpop.f32.mrf.mxu2  ;;  %v645_v61 = vpop.f32.mrf.mxu3 }
  0xed   : > { %v702_v62 = vpack.c.bf16 %v605_v60, %v605_v60  ;;  %v718_v63 = vpack.c.bf16 %v645_v61, %v645_v61  ;;  %v527_v0 = vpop.f32.mrf.mxu0  ;;  %v567_v1 = vpop.f32.mrf.mxu1 }
  0xee   : > { %v671_v2 = vpack.c.bf16 %v527_v0, %v527_v0  ;;  %v687_v3 = vpack.c.bf16 %v567_v1, %v567_v1 }
  0xef   : > { %767 = vst.msk [vmem:[%s1193_s24 + $0xa8] sm:$0xf] %vm724_vm3, %v702_v62 }
  0xf0   : > { %783 = vst.msk [vmem:[%s1193_s24 + $0xe8] sm:$0xf] %vm724_vm3, %v718_v63 }
  0xf1   : > { %736 = vst.msk [vmem:[%s1193_s24 + $0x2c] sm:$0xf] %vm724_vm3, %v671_v2 }
  0xf2   : > { %752 = vst.msk [vmem:[%s1193_s24 + $0x6c] sm:$0xf] %vm724_vm3, %v687_v3 }
  0xf4   : > { %v607_v4 = vpop.f32.mrf.mxu2  ;;  %v647_v5 = vpop.f32.mrf.mxu3 }
  0xf5   : > { %v703_v6 = vpack.c.bf16 %v607_v4, %v607_v4  ;;  %v719_v7 = vpack.c.bf16 %v647_v5, %v647_v5  ;;  %v530_v8 = vpop.f32.mrf.mxu0  ;;  %v570_v9 = vpop.f32.mrf.mxu1 }
  0xf6   : > { %v672_v10 = vpack.c.bf16 %v530_v8, %v530_v8  ;;  %v688_v11 = vpack.c.bf16 %v570_v9, %v570_v9 }
  0xf7   : > { %768 = vst.msk [vmem:[%s1193_s24 + $0xac] sm:$0xf] %vm724_vm3, %v703_v6 }
  0xf8   : > { %784 = vst.msk [vmem:[%s1193_s24 + $0xec] sm:$0xf] %vm724_vm3, %v719_v7 }
  0xf9   : > { %737 = vst.msk [vmem:[%s1193_s24 + $0x30] sm:$0xf] %vm724_vm3, %v672_v10 }
  0xfa   : > { %753 = vst.msk [vmem:[%s1193_s24 + $0x70] sm:$0xf] %vm724_vm3, %v688_v11 }
  0xfc   : > { %v610_v12 = vpop.f32.mrf.mxu2  ;;  %v650_v13 = vpop.f32.mrf.mxu3 }
  0xfd   : > { %v704_v14 = vpack.c.bf16 %v610_v12, %v610_v12  ;;  %v720_v15 = vpack.c.bf16 %v650_v13, %v650_v13  ;;  %v532_v16 = vpop.f32.mrf.mxu0  ;;  %v572_v17 = vpop.f32.mrf.mxu1 }
  0xfe   : > { %v673_v18 = vpack.c.bf16 %v532_v16, %v532_v16  ;;  %v689_v19 = vpack.c.bf16 %v572_v17, %v572_v17 }
  0xff   : > { %769 = vst.msk [vmem:[%s1193_s24 + $0xb0] sm:$0xf] %vm724_vm3, %v704_v14 }
 0x100   : > { %785 = vst.msk [vmem:[%s1193_s24 + $0xf0] sm:$0xf] %vm724_vm3, %v720_v15 }
 0x101   : > { %738 = vst.msk [vmem:[%s1193_s24 + $0x34] sm:$0xf] %vm724_vm3, %v673_v18 }
 0x102   : > { %754 = vst.msk [vmem:[%s1193_s24 + $0x74] sm:$0xf] %vm724_vm3, %v689_v19 }
 0x104   : > { %v612_v20 = vpop.f32.mrf.mxu2  ;;  %v652_v21 = vpop.f32.mrf.mxu3 }
 0x105   : > { %v705_v22 = vpack.c.bf16 %v612_v20, %v612_v20  ;;  %v721_v23 = vpack.c.bf16 %v652_v21, %v652_v21  ;;  %v535_v24 = vpop.f32.mrf.mxu0  ;;  %v575_v25 = vpop.f32.mrf.mxu1 }
 0x106   : > { %v674_v26 = vpack.c.bf16 %v535_v24, %v535_v24  ;;  %v690_v27 = vpack.c.bf16 %v575_v25, %v575_v25 }
 0x107   : > { %770 = vst.msk [vmem:[%s1193_s24 + $0xb4] sm:$0xf] %vm724_vm3, %v705_v22 }
 0x108   : > { %786 = vst.msk [vmem:[%s1193_s24 + $0xf4] sm:$0xf] %vm724_vm3, %v721_v23 }
 0x109   : > { %739 = vst.msk [vmem:[%s1193_s24 + $0x38] sm:$0xf] %vm724_vm3, %v674_v26 }
 0x10a   : > { %755 = vst.msk [vmem:[%s1193_s24 + $0x78] sm:$0xf] %vm724_vm3, %v690_v27 }
 0x10c   : > { %v615_v28 = vpop.f32.mrf.mxu2  ;;  %v655_v29 = vpop.f32.mrf.mxu3 }
 0x10d   : > { %v706_v30 = vpack.c.bf16 %v615_v28, %v615_v28  ;;  %v722_v31 = vpack.c.bf16 %v655_v29, %v655_v29  ;;  %v537_v32 = vpop.f32.mrf.mxu0  ;;  %v577_v33 = vpop.f32.mrf.mxu1 }
 0x10e   : > { %v675_v34 = vpack.c.bf16 %v537_v32, %v537_v32  ;;  %v691_v35 = vpack.c.bf16 %v577_v33, %v577_v33 }
 0x10f   : > { %771 = vst.msk [vmem:[%s1193_s24 + $0xb8] sm:$0xf] %vm724_vm3, %v706_v30 }
 0x110   : > { %787 = vst.msk [vmem:[%s1193_s24 + $0xf8] sm:$0xf] %vm724_vm3, %v722_v31 }
 0x111   : > { %740 = vst.msk [vmem:[%s1193_s24 + $0x3c] sm:$0xf] %vm724_vm3, %v675_v34 }
 0x112   : > { %756 = vst.msk [vmem:[%s1193_s24 + $0x7c] sm:$0xf] %vm724_vm3, %v691_v35 }
 0x114   : > { %v617_v36 = vpop.f32.mrf.mxu2  ;;  %v657_v37 = vpop.f32.mrf.mxu3 }
 0x115   : > { %v707_v38 = vpack.c.bf16 %v617_v36, %v617_v36  ;;  %v723_v39 = vpack.c.bf16 %v657_v37, %v657_v37 }
 0x117   : > { %772 = vst.msk [vmem:[%s1193_s24 + $0xbc] sm:$0xf] %vm724_vm3, %v707_v38 }
 0x118   : > { %788 = vst.msk [vmem:[%s1193_s24 + $0xfc] sm:$0xf] %vm724_vm3, %v723_v39 }
 0x119 PF: > { %s12_s9 = sadd.s32 1, %s1079_s9  }
 0x11a   : > { %p9_p4 = scmp.ge.s32.totalorder %s12_s9, 51  }
 0x11c   :  { %11 = sbr.rel (!%p9_p4) target bundleno = 1 (0x1), region = 58 }

</bundles_post_ra>
